<compile_context>
chip_gen: v7x
topology: tpu7x:2x2x1
jax: 0.10.0
libtpu: 0.0.40
codegen_flags: <defaults>
</compile_context>

<pallas_src>
import functools
import math

import jax
import jax.numpy as jnp
import numpy as np
from jax.experimental import pallas as pl
from jax.experimental.pallas import tpu as pltpu

_BN_EPS = 1e-5


def _round_up(x, m):
    return (x + m - 1) // m * m


# ----------------------------------------------------------------------------
# Fused kernel: n_conv x (Conv1d 'same' + folded-BN bias + ReLU) + MaxPool1d(2,2)
# ----------------------------------------------------------------------------
def _fused_vgg_kernel(x_ref, w_ref, b_ref, o_ref, xpad_ref, *,
                      L, K, pad, C_in, n_conv):
    # x_ref:    (TB, L, C_in)              raw input tile (unpadded channels)
    # w_ref:    (n_conv, K*C_pad, C_pad)   BN-scale-folded, zero-padded weights
    # b_ref:    (n_conv, 1, C_pad)         folded BN bias
    # o_ref:    (TB, L//2, C_pad)          lane-dense pooled output
    # xpad_ref: (TB, L + 2*pad, C_pad)     VMEM activation buffer (with halo)
    TB = x_ref.shape[0]
    C_pad = o_ref.shape[-1]
    L_out = L // 2

    # Zero scratch once: provides the 'same' zero halo and zero channel padding.
    xpad_ref[...] = jnp.zeros(xpad_ref.shape, xpad_ref.dtype)
    xpad_ref[:, pad:pad + L, :C_in] = x_ref[...].astype(xpad_ref.dtype)

    # Chain all conv+BN+ReLU stages fully in VMEM (n_conv is static).
    for li in range(n_conv):
        # im2col: K sublane-shifted views concatenated along lanes.
        cols = jnp.concatenate(
            [xpad_ref[:, k:k + L, :] for k in range(K)], axis=-1)
        y = jnp.dot(cols.reshape(TB * L, K * C_pad), w_ref[li],
                    preferred_element_type=jnp.float32)
        y = jnp.maximum(y + b_ref[li], 0.0)                    # bias + ReLU
        xpad_ref[:, pad:pad + L, :] = y.reshape(TB, L, C_pad)  # edges stay zero

    # Fused MaxPool1d(kernel=2, stride=2): strided reads + one dense store.
    even = xpad_ref[:, pl.ds(pad, L_out, stride=2), :]
    odd = xpad_ref[:, pl.ds(pad + 1, L_out, stride=2), :]
    o_ref[...] = jnp.maximum(even, odd).astype(o_ref.dtype)


def _pick_batch_tile(B, L, Lp, L_out, C_in, C_pad, n_conv, K,
                     budget=24 << 20):
    """Largest divisor of B whose (double-buffered) VMEM footprint fits."""
    best = 1
    for tb in range(1, B + 1):
        if B % tb:
            continue
        est = 4 * (2 * tb * L * C_in            # input block (double-buffered)
                   + 2 * tb * L_out * C_pad     # output block (double-buffered)
                   + tb * Lp * C_pad            # activation scratch
                   + 2 * n_conv * (K * C_pad * C_pad + C_pad))  # weights + bias
        if est <= budget:
            best = tb
    return best


# ----------------------------------------------------------------------------
# _VGGBlock forward: fold BN into weights, call the fused kernel once.
# ----------------------------------------------------------------------------
def vgg_block_forward(x_ncl, params, eps=_BN_EPS):
    """x_ncl: (B, C_in, L) like PyTorch; returns (B, n_filters, L // 2)."""
    B, C_in, L = x_ncl.shape
    n_conv = len(params)
    C_out, _, K = params[0]["w"].shape
    pad = (K - 1) // 2
    Lp = L + 2 * pad
    L_out = L // 2
    C_pad = _round_up(max(C_in, C_out, 128), 128)   # lane-dense channel width

    # Fold inference BatchNorm into conv weights / bias; zero-pad & stack layers.
    w_stack, b_stack = [], []
    for li, p in enumerate(params):
        c_in_l = C_in if li == 0 else C_out
        scale = p["gamma"] / jnp.sqrt(p["var"] + eps)           # (C_out,)
        w = p["w"] * scale[:, None, None]                       # (C_out, c_in_l, K)
        w = jnp.transpose(w, (2, 1, 0))                         # (K, c_in_l, C_out)
        w = jnp.pad(w, ((0, 0), (0, C_pad - c_in_l), (0, C_pad - C_out)))
        w_stack.append(w.reshape(K * C_pad, C_pad))
        b = p["beta"] - p["mean"] * scale
        b_stack.append(jnp.pad(b, (0, C_pad - C_out)).reshape(1, C_pad))
    w_all = jnp.stack(w_stack).astype(jnp.float32)   # (n_conv, K*C_pad, C_pad)
    b_all = jnp.stack(b_stack).astype(jnp.float32)   # (n_conv, 1, C_pad)

    x_blc = jnp.transpose(x_ncl, (0, 2, 1))          # NCL -> (B, L, C_in)

    TB = _pick_batch_tile(B, L, Lp, L_out, C_in, C_pad, n_conv, K)
    blk_bytes = 4 * (2 * TB * L * C_in + 2 * TB * L_out * C_pad
                     + TB * Lp * C_pad
                     + 2 * n_conv * (K * C_pad * C_pad + C_pad))
    # Leave headroom; cap well under v7x's 64 MiB physical VMEM.
    vmem_limit = int(min(max(blk_bytes + (8 << 20), 16 << 20), 48 << 20))

    kern = functools.partial(_fused_vgg_kernel, L=L, K=K, pad=pad,
                             C_in=C_in, n_conv=n_conv)
    out = pl.pallas_call(
        kern,
        out_shape=jax.ShapeDtypeStruct((B, L_out, C_pad), x_blc.dtype),
        grid_spec=pltpu.PrefetchScalarGridSpec(
            num_scalar_prefetch=0,
            grid=(B // TB,),
            in_specs=[
                pl.BlockSpec((TB, L, C_in), lambda b: (b, 0, 0)),
                pl.BlockSpec((n_conv, K * C_pad, C_pad), lambda b: (0, 0, 0)),
                pl.BlockSpec((n_conv, 1, C_pad), lambda b: (0, 0, 0)),
            ],
            out_specs=pl.BlockSpec((TB, L_out, C_pad), lambda b: (b, 0, 0)),
            scratch_shapes=[pltpu.VMEM((TB, Lp, C_pad), jnp.float32)],
        ),
        compiler_params=pltpu.CompilerParams(
            dimension_semantics=("parallel",),
            vmem_limit_bytes=vmem_limit),
    )(x_blc, w_all, b_all)

    # Glue: drop channel padding, back to NCL.
    return jnp.transpose(out[:, :, :C_out], (0, 2, 1))


# ----------------------------------------------------------------------------
# Parameter init (PyTorch-like) + pure-JAX reference (eval-mode semantics)
# ----------------------------------------------------------------------------
def init_vgg_block_params(key, in_ch, n_filters, n_conv, kernel_size):
    params = []
    c_in = in_ch
    for _ in range(n_conv):
        key, k1, k2, k3, k4, k5 = jax.random.split(key, 6)
        fan_in = c_in * kernel_size
        bound = 1.0 / math.sqrt(fan_in)                 # PyTorch Conv1d default init
        params.append(dict(
            w=jax.random.uniform(k1, (n_filters, c_in, kernel_size),
                                 jnp.float32, -bound, bound),
            gamma=jax.random.uniform(k2, (n_filters,), jnp.float32, 0.5, 1.5),
            beta=jax.random.uniform(k3, (n_filters,), jnp.float32, -0.1, 0.1),
            mean=jax.random.uniform(k4, (n_filters,), jnp.float32, -0.1, 0.1),
            var=jax.random.uniform(k5, (n_filters,), jnp.float32, 0.5, 1.5),
        ))
        c_in = n_filters
    return params


def vgg_block_reference(x_ncl, params, eps=_BN_EPS):
    x = x_ncl
    for p in params:
        K = p["w"].shape[-1]
        pad = (K - 1) // 2
        y = jax.lax.conv_general_dilated(
            x, p["w"], window_strides=(1,), padding=[(pad, pad)],
            dimension_numbers=("NCH", "OIH", "NCH"))
        scale = p["gamma"] / jnp.sqrt(p["var"] + eps)
        bias = p["beta"] - p["mean"] * scale
        x = jnp.maximum(y * scale[None, :, None] + bias[None, :, None], 0.0)
    B, C, L = x.shape
    return x[:, :, :(L // 2) * 2].reshape(B, C, L // 2, 2).max(-1)


if __name__ == "__main__":
    key = jax.random.PRNGKey(0)
    k_x, k_p = jax.random.split(key)

    B, C_in, L = 2, 4, 16
    n_filters, n_conv, kernel_size = 8, 2, 3

    x = jax.random.normal(k_x, (B, C_in, L), jnp.float32)
    params = init_vgg_block_params(k_p, C_in, n_filters, n_conv, kernel_size)

    out = jax.block_until_ready(vgg_block_forward(x, params))
    assert out.shape == (B, n_filters, L // 2), out.shape

    ref = vgg_block_reference(x, params)
    np.testing.assert_allclose(np.asarray(out), np.asarray(ref),
                               rtol=1e-3, atol=1e-3)
    print("KERNEL_OK")
</pallas_src>

<mosaic_0001>
module attributes {stable_mosaic.version = 11 : i64} {
  func.func @_fused_vgg_kernel(%arg0: i32, %arg1: memref<2x16x4xf32, #tpu.memory_space<vmem>>, %arg2: memref<2x384x128xf32, #tpu.memory_space<vmem>>, %arg3: memref<2x1x128xf32, #tpu.memory_space<vmem>>, %arg4: memref<2x8x128xf32, #tpu.memory_space<vmem>>, %arg5: memref<2x18x128xf32, #tpu.memory_space<vmem>>) attributes {dimension_semantics = [#tpu.dimension_semantics<parallel>], iteration_bounds = array<i64: 1>, scalar_prefetch = 0 : i64, scratch_operands = 1 : i64, tpu.core_type = #tpu.core_type<tc>, window_params = [{transform_indices = @transform_0, window_bounds = array<i64: 2, 16, 4>}, {pipeline_mode = #tpu.pipeline_mode<synchronous>, transform_indices = @transform_1, window_bounds = array<i64: 2, 384, 128>}, {pipeline_mode = #tpu.pipeline_mode<synchronous>, transform_indices = @transform_2, window_bounds = array<i64: 2, 1, 128>}, {transform_indices = @transform_3, window_bounds = array<i64: 2, 8, 128>}]} {
    %cst = arith.constant 0.000000e+00 : f32
    %0 = vector.broadcast %cst : f32 to vector<2x18x128xf32>
    %c0 = arith.constant 0 : index
    %c0_0 = arith.constant 0 : index
    %c0_1 = arith.constant 0 : index
    %1 = vector.load %arg5[%c0, %c0_0, %c0_1] : memref<2x18x128xf32, #tpu.memory_space<vmem>>, vector<2x18x128xf32>
    tpu.vector_store %arg5[%c0, %c0_0, %c0_1], %0 {strides = array<i32>} : memref<2x18x128xf32, #tpu.memory_space<vmem>>, vector<2x18x128xf32>,
    %c0_2 = arith.constant 0 : index
    %c0_3 = arith.constant 0 : index
    %c0_4 = arith.constant 0 : index
    %2 = vector.load %arg1[%c0_2, %c0_3, %c0_4] : memref<2x16x4xf32, #tpu.memory_space<vmem>>, vector<2x16x4xf32>
    %c0_5 = arith.constant 0 : index
    %c1 = arith.constant 1 : index
    %c0_6 = arith.constant 0 : index
    %3 = vector.load %arg5[%c0_5, %c1, %c0_6] : memref<2x18x128xf32, #tpu.memory_space<vmem>>, vector<2x16x4xf32>
    tpu.vector_store %arg5[%c0_5, %c1, %c0_6], %2 {strides = array<i32>} : memref<2x18x128xf32, #tpu.memory_space<vmem>>, vector<2x16x4xf32>,
    %c0_7 = arith.constant 0 : index
    %c0_8 = arith.constant 0 : index
    %c0_9 = arith.constant 0 : index
    %4 = vector.load %arg5[%c0_7, %c0_8, %c0_9] : memref<2x18x128xf32, #tpu.memory_space<vmem>>, vector<2x16x128xf32>
    %c0_10 = arith.constant 0 : index
    %c1_11 = arith.constant 1 : index
    %c0_12 = arith.constant 0 : index
    %5 = vector.load %arg5[%c0_10, %c1_11, %c0_12] : memref<2x18x128xf32, #tpu.memory_space<vmem>>, vector<2x16x128xf32>
    %c0_13 = arith.constant 0 : index
    %c2 = arith.constant 2 : index
    %c0_14 = arith.constant 0 : index
    %6 = vector.load %arg5[%c0_13, %c2, %c0_14] : memref<2x18x128xf32, #tpu.memory_space<vmem>>, vector<2x16x128xf32>
    %7 = tpu.concatenate %4, %5, %6 in 2 : vector<2x16x128xf32>, vector<2x16x128xf32>, vector<2x16x128xf32> -> vector<2x16x384xf32>
    %8 = vector.shape_cast %7 : vector<2x16x384xf32> to vector<32x384xf32>
    %c0_15 = arith.constant 0 : index
    %c0_16 = arith.constant 0 : index
    %c0_17 = arith.constant 0 : index
    %9 = vector.load %arg2[%c0_15, %c0_16, %c0_17] : memref<2x384x128xf32, #tpu.memory_space<vmem>>, vector<1x384x128xf32>
    %10 = vector.shape_cast %9 : vector<1x384x128xf32> to vector<384x128xf32>
    %cst_18 = arith.constant dense<0.000000e+00> : vector<32x128xf32>
    %11 = tpu.matmul %8, %10, %cst_18 {dimension_numbers = #tpu.dot_dimension_numbers<[1], [0], [0], [1], [0, 0, 1, 1], [], []>} : vector<32x384xf32>, vector<384x128xf32>, vector<32x128xf32> -> vector<32x128xf32>
    %c0_19 = arith.constant 0 : index
    %c0_20 = arith.constant 0 : index
    %c0_21 = arith.constant 0 : index
    %12 = vector.load %arg3[%c0_19, %c0_20, %c0_21] : memref<2x1x128xf32, #tpu.memory_space<vmem>>, vector<1x1x128xf32>
    %13 = vector.shape_cast %12 : vector<1x1x128xf32> to vector<1x128xf32>
    %14 = vector.broadcast %13 : vector<1x128xf32> to vector<32x128xf32>
    %15 = arith.addf %11, %14 : vector<32x128xf32>
    %cst_22 = arith.constant 0.000000e+00 : f32
    %16 = vector.broadcast %cst_22 : f32 to vector<32x128xf32>
    %17 = arith.maximumf %15, %16 : vector<32x128xf32>
    %18 = vector.shape_cast %17 : vector<32x128xf32> to vector<2x16x128xf32>
    %c0_23 = arith.constant 0 : index
    %c1_24 = arith.constant 1 : index
    %c0_25 = arith.constant 0 : index
    %19 = vector.load %arg5[%c0_23, %c1_24, %c0_25] : memref<2x18x128xf32, #tpu.memory_space<vmem>>, vector<2x16x128xf32>
    tpu.vector_store %arg5[%c0_23, %c1_24, %c0_25], %18 {strides = array<i32>} : memref<2x18x128xf32, #tpu.memory_space<vmem>>, vector<2x16x128xf32>,
    %c0_26 = arith.constant 0 : index
    %c0_27 = arith.constant 0 : index
    %c0_28 = arith.constant 0 : index
    %20 = vector.load %arg5[%c0_26, %c0_27, %c0_28] : memref<2x18x128xf32, #tpu.memory_space<vmem>>, vector<2x16x128xf32>
    %c0_29 = arith.constant 0 : index
    %c1_30 = arith.constant 1 : index
    %c0_31 = arith.constant 0 : index
    %21 = vector.load %arg5[%c0_29, %c1_30, %c0_31] : memref<2x18x128xf32, #tpu.memory_space<vmem>>, vector<2x16x128xf32>
    %c0_32 = arith.constant 0 : index
    %c2_33 = arith.constant 2 : index
    %c0_34 = arith.constant 0 : index
    %22 = vector.load %arg5[%c0_32, %c2_33, %c0_34] : memref<2x18x128xf32, #tpu.memory_space<vmem>>, vector<2x16x128xf32>
    %23 = tpu.concatenate %20, %21, %22 in 2 : vector<2x16x128xf32>, vector<2x16x128xf32>, vector<2x16x128xf32> -> vector<2x16x384xf32>
    %24 = vector.shape_cast %23 : vector<2x16x384xf32> to vector<32x384xf32>
    %c1_35 = arith.constant 1 : index
    %c0_36 = arith.constant 0 : index
    %c0_37 = arith.constant 0 : index
    %25 = vector.load %arg2[%c1_35, %c0_36, %c0_37] : memref<2x384x128xf32, #tpu.memory_space<vmem>>, vector<1x384x128xf32>
    %26 = vector.shape_cast %25 : vector<1x384x128xf32> to vector<384x128xf32>
    %cst_38 = arith.constant dense<0.000000e+00> : vector<32x128xf32>
    %27 = tpu.matmul %24, %26, %cst_38 {dimension_numbers = #tpu.dot_dimension_numbers<[1], [0], [0], [1], [0, 0, 1, 1], [], []>} : vector<32x384xf32>, vector<384x128xf32>, vector<32x128xf32> -> vector<32x128xf32>
    %c1_39 = arith.constant 1 : index
    %c0_40 = arith.constant 0 : index
    %c0_41 = arith.constant 0 : index
    %28 = vector.load %arg3[%c1_39, %c0_40, %c0_41] : memref<2x1x128xf32, #tpu.memory_space<vmem>>, vector<1x1x128xf32>
    %29 = vector.shape_cast %28 : vector<1x1x128xf32> to vector<1x128xf32>
    %30 = vector.broadcast %29 : vector<1x128xf32> to vector<32x128xf32>
    %31 = arith.addf %27, %30 : vector<32x128xf32>
    %cst_42 = arith.constant 0.000000e+00 : f32
    %32 = vector.broadcast %cst_42 : f32 to vector<32x128xf32>
    %33 = arith.maximumf %31, %32 : vector<32x128xf32>
    %34 = vector.shape_cast %33 : vector<32x128xf32> to vector<2x16x128xf32>
    %c0_43 = arith.constant 0 : index
    %c1_44 = arith.constant 1 : index
    %c0_45 = arith.constant 0 : index
    %35 = vector.load %arg5[%c0_43, %c1_44, %c0_45] : memref<2x18x128xf32, #tpu.memory_space<vmem>>, vector<2x16x128xf32>
    tpu.vector_store %arg5[%c0_43, %c1_44, %c0_45], %34 {strides = array<i32>} : memref<2x18x128xf32, #tpu.memory_space<vmem>>, vector<2x16x128xf32>,
    %c0_46 = arith.constant 0 : index
    %c1_47 = arith.constant 1 : index
    %c0_48 = arith.constant 0 : index
    %36 = tpu.strided_load %arg5[%c0_46, %c1_47, %c0_48] {strides = array<i32: 1, 2, 1>} : memref<2x18x128xf32, #tpu.memory_space<vmem>>, vector<2x8x128xf32>
    %c0_49 = arith.constant 0 : index
    %c2_50 = arith.constant 2 : index
    %c0_51 = arith.constant 0 : index
    %37 = tpu.strided_load %arg5[%c0_49, %c2_50, %c0_51] {strides = array<i32: 1, 2, 1>} : memref<2x18x128xf32, #tpu.memory_space<vmem>>, vector<2x8x128xf32>
    %38 = arith.maximumf %36, %37 : vector<2x8x128xf32>
    %c0_52 = arith.constant 0 : index
    %c0_53 = arith.constant 0 : index
    %c0_54 = arith.constant 0 : index
    %39 = vector.load %arg4[%c0_52, %c0_53, %c0_54] : memref<2x8x128xf32, #tpu.memory_space<vmem>>, vector<2x8x128xf32>
    tpu.vector_store %arg4[%c0_52, %c0_53, %c0_54], %38 {strides = array<i32>} : memref<2x8x128xf32, #tpu.memory_space<vmem>>, vector<2x8x128xf32>,
    return
  }
  func.func @transform_0(%arg0: i32) -> (i32, i32, i32) {
    %c0_i32 = arith.constant 0 : i32
    %c0_i32_0 = arith.constant 0 : i32
    %c0_i32_1 = arith.constant 0 : i32
    return %arg0, %c0_i32, %c0_i32_0 : i32, i32, i32
  }
  func.func @transform_1(%arg0: i32) -> (i32, i32, i32) {
    %c0_i32 = arith.constant 0 : i32
    %c0_i32_0 = arith.constant 0 : i32
    %c0_i32_1 = arith.constant 0 : i32
    %c0_i32_2 = arith.constant 0 : i32
    return %c0_i32, %c0_i32_0, %c0_i32_1 : i32, i32, i32
  }
  func.func @transform_2(%arg0: i32) -> (i32, i32, i32) {
    %c0_i32 = arith.constant 0 : i32
    %c0_i32_0 = arith.constant 0 : i32
    %c0_i32_1 = arith.constant 0 : i32
    %c0_i32_2 = arith.constant 0 : i32
    return %c0_i32, %c0_i32_0, %c0_i32_1 : i32, i32, i32
  }
  func.func @transform_3(%arg0: i32) -> (i32, i32, i32) {
    %c0_i32 = arith.constant 0 : i32
    %c0_i32_0 = arith.constant 0 : i32
    %c0_i32_1 = arith.constant 0 : i32
    return %arg0, %c0_i32, %c0_i32_0 : i32, i32, i32
  }
}

</mosaic_0001>

<bundles_post_ra>
// kernel: tpu_custom_call.1
= control target key start
LH: loop header
LB: loop body
LE: loop exit
PB: predicated region body
PF: predicated region fallthrough
CT: control target
= control target key end

     0   :  { %8 = vsyncpa [#allocation4], 0  ;;  %s1030_s0 = inlined_call_operand.vmem [shape: f32[2,16,4], index: 0, kind: input, shape index: {}]   ;;  %s1031_s1 = inlined_call_operand.hbm [shape: f32[2,384,128], index: 1, kind: input, shape index: {}]   ;;  %s1032_s2 = inlined_call_operand.vmem [shape: f32[2,1,128], index: 2, kind: input, shape index: {}]   ;;  %s1033_s3 = inlined_call_operand.hbm [shape: f32[2,8,128], index: 3, kind: output, shape index: {}]  }
   0x1   :  { %9 = vsyncpa [#allocation5], 0  ;;  %s953_s12 = smov [#allocation3]   ;;  %s905_s16 = scalar_lea.hbm %s1031_s1, 12288 }
   0x2   :  { %s17_s13 = sshll.u32 %s953_s12, 4  ;;  %p906_p0 = scmp.ne.s32.totalorder %s1031_s1, %s905_s16  ;;  %s18_s13 = int_to_ptr.vmem [resolvable:$true] %s17_s13 }
   0x3   :  { %p909_p1 = scmp.lt.u32.totalorder %s905_s16, %s1031_s1 }
   0x5   :  { %p911_p2 = pnand %p909_p1, %p906_p0 }
   0x7   :  { %914 = shalt.err (!%p911_p2)
}
   0x8   :  { %s915_s21 = scalar_lea.vmem %s18_s13, 12288  ;;  %p920_p4 = scmp.lt.s32.totalorder %s18_s13, %s18_s13 }
   0x9   :  { %p916_p3 = scmp.ne.s32.totalorder %s18_s13, %s915_s21  ;;  %p921_p5 = scmp.lt.s32.totalorder %s915_s21, %s915_s21 }
   0xb   :  { %p922_p6 = por %p921_p5, %p920_p4 }
   0xd   :  { %p923_p7 = pnand %p922_p6, %p916_p3 }
   0xf   :  { %926 = shalt.err (!%p923_p7)
}
  0x10   :  { %s954_s22 = smov 128   ;;  %s955_s23 = smov 8  }
  0x11   :  { %23 = dma.hbm_to_vmem [thread:$0]  %s1031_s1, 12288, %s18_s13, [#allocation4], %s954_s22, %s954_s22, %s955_s23  }
  0x12   :  { %949 = dma.done.wait [#allocation4], 12288  }
  0x13   :  { %950 = vsyncadd [#allocation4], 4294955008  ;;  %v956_v0 = vmov 0.0   ;;  %v72_v1 = vld [vmem:[#allocation3 + $0x80] sm:$0xff]  ;;  %v73_v2 = vld [vmem:[#allocation3 + $0x88] sm:$0xff]  ;;  %vm39_vm0 = vcmask 31744  }
  0x14   :  { %29 = vst [vmem:[#allocation2] sm:$0xff] %v956_v0  ;;  %30 = vst [vmem:[#allocation2 + $0x8] sm:$0xff] %v956_v0  ;;  %v56_v3 = vld [vmem:[#allocation3] sm:$0xff]  ;;  %v772_v4 = vpack.c.bf16 %v73_v2, %v72_v1  ;;  %v57_v5 = vld [vmem:[#allocation3 + $0x8] sm:$0xff] }
  0x15   :  { %31 = vst [vmem:[#allocation2 + $0x10] sm:$0x3] %v956_v0  ;;  %32 = vst [vmem:[#allocation2 + $0x18] sm:$0xff] %v956_v0  ;;  %v88_v6 = vld [vmem:[#allocation3 + $0x100] sm:$0xff]  ;;  %v89_v7 = vld [vmem:[#allocation3 + $0x108] sm:$0xff]  ;;  %v774_v8 = vpack.c.bf16 %v57_v5, %v56_v3 }
  0x16   :  { %33 = vst [vmem:[#allocation2 + $0x20] sm:$0xff] %v956_v0  ;;  %34 = vst [vmem:[#allocation2 + $0x28] sm:$0x3] %v956_v0  ;;  %v804_v9 = vpack.c.bf16 %v89_v7, %v88_v6  ;;  %v74_v10 = vld [vmem:[#allocation3 + $0x90] sm:$0xff]  ;;  %v75_v11 = vld [vmem:[#allocation3 + $0x98] sm:$0xff]  ;;  %773 = vmatprep.subr.bf16.mxu0 %v772_v4 }
  0x17   :  { %v58_v12 = vld [vmem:[#allocation3 + $0x10] sm:$0xff]  ;;  %v776_v13 = vpack.c.bf16 %v75_v11, %v74_v10  ;;  %v59_v14 = vld [vmem:[#allocation3 + $0x18] sm:$0xff]  ;;  %775 = vmatpush3.bf16.msra.mxu0 %v774_v8  ;;  %v76_v19 = vld [vmem:[#allocation3 + $0xa0] sm:$0xff] }
  0x18   :  { %v90_v15 = vld [vmem:[#allocation3 + $0x110] sm:$0xff]  ;;  %v91_v16 = vld [vmem:[#allocation3 + $0x118] sm:$0xff]  ;;  %805 = vmatprep.subr.bf16.mxu1 %v804_v9  ;;  %v778_v17 = vpack.c.bf16 %v59_v14, %v58_v12  ;;  %v77_v20 = vld [vmem:[#allocation3 + $0xa8] sm:$0xff] }
  0x19   :  { %v808_v18 = vpack.c.bf16 %v91_v16, %v90_v15  ;;  %v60_v21 = vld [vmem:[#allocation3 + $0x20] sm:$0xff]  ;;  %777 = vmatprep.subr.bf16.mxu0 %v776_v13  ;;  %807 = vmatpush3.bf16.msra.mxu1 %v804_v9  ;;  %v780_v22 = vpack.c.bf16 %v77_v20, %v76_v19  ;;  %v61_v23 = vld [vmem:[#allocation3 + $0x28] sm:$0xff]  ;;  %v78_v27 = vld [vmem:[#allocation3 + $0xb0] sm:$0xff] }
  0x1a   :  { %v92_v24 = vld [vmem:[#allocation3 + $0x120] sm:$0xff]  ;;  %v93_v25 = vld [vmem:[#allocation3 + $0x128] sm:$0xff]  ;;  %v79_v28 = vld [vmem:[#allocation3 + $0xb8] sm:$0xff]  ;;  %v782_v31 = vpack.c.bf16 %v61_v23, %v60_v21 }
  0x1b   :  { %809 = vmatprep.subr.bf16.mxu1 %v808_v18  ;;  %v812_v26 = vpack.c.bf16 %v93_v25, %v92_v24  ;;  %v94_v29 = vld [vmem:[#allocation3 + $0x130] sm:$0xff]  ;;  %v95_v30 = vld [vmem:[#allocation3 + $0x138] sm:$0xff]  ;;  %779 = vmatpush3.bf16.msra.mxu0 %v778_v17  ;;  %v784_v32 = vpack.c.bf16 %v79_v28, %v78_v27  ;;  %v80_v36 = vld [vmem:[#allocation3 + $0xc0] sm:$0xff] }
  0x1c   :  { %781 = vmatprep.subr.bf16.mxu0 %v780_v22  ;;  %v62_v33 = vld [vmem:[#allocation3 + $0x30] sm:$0xff]  ;;  %v63_v34 = vld [vmem:[#allocation3 + $0x38] sm:$0xff]  ;;  %v816_v35 = vpack.c.bf16 %v95_v30, %v94_v29  ;;  %v81_v37 = vld [vmem:[#allocation3 + $0xc8] sm:$0xff] }
  0x1d   :  { %811 = vmatpush3.bf16.msra.mxu1 %v808_v18  ;;  %v96_v38 = vld [vmem:[#allocation3 + $0x140] sm:$0xff]  ;;  %v97_v39 = vld [vmem:[#allocation3 + $0x148] sm:$0xff]  ;;  %v786_v40 = vpack.c.bf16 %v63_v34, %v62_v33  ;;  %v788_v41 = vpack.c.bf16 %v81_v37, %v80_v36  ;;  %v82_v45 = vld [vmem:[#allocation3 + $0xd0] sm:$0xff] }
  0x1e   :  { %813 = vmatprep.subr.bf16.mxu1 %v812_v26  ;;  %v64_v42 = vld [vmem:[#allocation3 + $0x40] sm:$0xff]  ;;  %v65_v43 = vld [vmem:[#allocation3 + $0x48] sm:$0xff]  ;;  %v820_v44 = vpack.c.bf16 %v97_v39, %v96_v38  ;;  %v83_v46 = vld [vmem:[#allocation3 + $0xd8] sm:$0xff] }
  0x1f   :  { %783 = vmatpush3.bf16.msra.mxu0 %v782_v31  ;;  %v98_v47 = vld [vmem:[#allocation3 + $0x150] sm:$0xff]  ;;  %v99_v48 = vld [vmem:[#allocation3 + $0x158] sm:$0xff]  ;;  %v790_v50 = vpack.c.bf16 %v65_v43, %v64_v42  ;;  %v37_v52 = vld [vmem:[%s1030_s0 + $0x10] sm:$0xff]  ;;  %v792_v53 = vpack.c.bf16 %v83_v46, %v82_v45 }
  0x20   :  { %785 = vmatprep.subr.bf16.mxu0 %v784_v32  ;;  %v35_v49 = vld [vmem:[%s1030_s0] sm:$0xff]  ;;  %v36_v51 = vld [vmem:[%s1030_s0 + $0x8] sm:$0xff]  ;;  %42 = vst.msk [vmem:[#allocation2 + $0x19] sm:$0xff] %vm39_vm0, %v37_v52  ;;  %v38_v56 = vld [vmem:[%s1030_s0 + $0x18] sm:$0xff]  ;;  %v824_v57 = vpack.c.bf16 %v99_v48, %v98_v47 }
  0x21   :  { %815 = vmatpush3.bf16.msra.mxu1 %v812_v26  ;;  %40 = vst.msk [vmem:[#allocation2 + $0x1] sm:$0xff] %vm39_vm0, %v35_v49  ;;  %v66_v54 = vld [vmem:[#allocation3 + $0x50] sm:$0xff]  ;;  %v67_v55 = vld [vmem:[#allocation3 + $0x58] sm:$0xff]  ;;  %41 = vst.msk [vmem:[#allocation2 + $0x9] sm:$0xff] %vm39_vm0, %v36_v51 }
  0x22   :  { %817 = vmatprep.subr.bf16.mxu1 %v816_v35  ;;  %v84_v58 = vld [vmem:[#allocation3 + $0xe0] sm:$0xff]  ;;  %v85_v59 = vld [vmem:[#allocation3 + $0xe8] sm:$0xff]  ;;  %43 = vst.msk [vmem:[#allocation2 + $0x21] sm:$0xff] %vm39_vm0, %v38_v56  ;;  %v794_v62 = vpack.c.bf16 %v67_v55, %v66_v54  ;;  %v86_v3 = vld [vmem:[#allocation3 + $0xf0] sm:$0xff] }
  0x23   :  { %787 = vmatpush3.bf16.msra.mxu0 %v786_v40  ;;  %v100_v60 = vld [vmem:[#allocation3 + $0x160] sm:$0xff]  ;;  %v101_v61 = vld [vmem:[#allocation3 + $0x168] sm:$0xff]  ;;  %v796_v63 = vpack.c.bf16 %v85_v59, %v84_v58  ;;  %v87_v4 = vld [vmem:[#allocation3 + $0xf8] sm:$0xff] }
  0x24   :  { %789 = vmatprep.subr.bf16.mxu0 %v788_v41  ;;  %v68_v0 = vld [vmem:[#allocation3 + $0x60] sm:$0xff]  ;;  %v69_v1 = vld [vmem:[#allocation3 + $0x68] sm:$0xff]  ;;  %v828_v2 = vpack.c.bf16 %v101_v61, %v100_v60  ;;  %v102_v6 = vld [vmem:[#allocation3 + $0x170] sm:$0xff]  ;;  %v800_v10 = vpack.c.bf16 %v87_v4, %v86_v3 }
  0x25   :  { %819 = vmatpush3.bf16.msra.mxu1 %v816_v35  ;;  %v103_v7 = vld [vmem:[#allocation3 + $0x178] sm:$0xff]  ;;  %v798_v8 = vpack.c.bf16 %v69_v1, %v68_v0  ;;  %v70_v11 = vld [vmem:[#allocation3 + $0x70] sm:$0xff]  ;;  %v318_v14 = vld [vmem:[#allocation3 + $0x200] sm:$0xff] }
  0x26   :  { %821 = vmatprep.subr.bf16.mxu1 %v820_v44  ;;  %v71_v12 = vld [vmem:[#allocation3 + $0x78] sm:$0xff]  ;;  %v832_v13 = vpack.c.bf16 %v103_v7, %v102_v6  ;;  %v319_v15 = vld [vmem:[#allocation3 + $0x208] sm:$0xff]  ;;  %v334_v16 = vld [vmem:[#allocation3 + $0x280] sm:$0xff] }
  0x27   :  { %791 = vmatpush3.bf16.msra.mxu0 %v790_v50  ;;  %v335_v17 = vld [vmem:[#allocation3 + $0x288] sm:$0xff]  ;;  %v802_v18 = vpack.c.bf16 %v71_v12, %v70_v11  ;;  %v836_v19 = vpack.c.bf16 %v319_v15, %v318_v14  ;;  %v302_v20 = vld [vmem:[#allocation3 + $0x180] sm:$0xff]  ;;  %v320_v23 = vld [vmem:[#allocation3 + $0x210] sm:$0xff] }
  0x28   :  { %793 = vmatprep.subr.bf16.mxu0 %v792_v53  ;;  %v48_v5 = vld [vmem:[#allocation2 + $0x1] sm:$0xff]  ;;  %v303_v21 = vld [vmem:[#allocation3 + $0x188] sm:$0xff]  ;;  %v868_v22 = vpack.c.bf16 %v335_v17, %v334_v16  ;;  %v49_v28 = vld [vmem:[#allocation2 + $0x9] sm:$0xff] }
  0x29   :  { %823 = vmatpush3.bf16.msra.mxu1 %v820_v44  ;;  %175 = vmatprep.mubr.f32.mxu0 %v48_v5  ;;  %v52_v9 = vld [vmem:[#allocation2 + $0x2] sm:$0xff]  ;;  %v53_v29 = vld [vmem:[#allocation2 + $0xa] sm:$0xff]  ;;  %v838_v30 = vpack.c.bf16 %v303_v21, %v302_v20  ;;  %v54_v31 = vld [vmem:[#allocation2 + $0x1a] sm:$0xff] }
  0x2a   :  { %825 = vmatprep.subr.bf16.mxu1 %v824_v57  ;;  %728 = vmatprep.mubr.f32.mxu1 %v52_v9  ;;  %v321_v24 = vld [vmem:[#allocation3 + $0x218] sm:$0xff]  ;;  %v44_v25 = vld [vmem:[#allocation2] sm:$0xff]  ;;  %v322_v35 = vld [vmem:[#allocation3 + $0x220] sm:$0xff] }
  0x2b   :  { %795 = vmatpush3.bf16.msra.mxu0 %v794_v62  ;;  %v336_v26 = vld [vmem:[#allocation3 + $0x290] sm:$0xff]  ;;  %v337_v27 = vld [vmem:[#allocation3 + $0x298] sm:$0xff]  ;;  %v840_v32 = vpack.c.bf16 %v321_v24, %v320_v23  ;;  %v323_v36 = vld [vmem:[#allocation3 + $0x228] sm:$0xff] }
  0x2c   :  { %797 = vmatprep.subr.bf16.mxu0 %v796_v63  ;;  %v304_v33 = vld [vmem:[#allocation3 + $0x190] sm:$0xff]  ;;  %v305_v34 = vld [vmem:[#allocation3 + $0x198] sm:$0xff]  ;;  %v872_v37 = vpack.c.bf16 %v337_v27, %v336_v26  ;;  %v338_v39 = vld [vmem:[#allocation3 + $0x2a0] sm:$0xff]  ;;  %v844_v44 = vpack.c.bf16 %v323_v36, %v322_v35 }
  0x2d   :  { %827 = vmatpush3.bf16.msra.mxu1 %v824_v57  ;;  %v45_v38 = vld [vmem:[#allocation2 + $0x8] sm:$0xff]  ;;  %v339_v40 = vld [vmem:[#allocation3 + $0x2a8] sm:$0xff]  ;;  %v842_v43 = vpack.c.bf16 %v305_v34, %v304_v33  ;;  %v306_v45 = vld [vmem:[#allocation3 + $0x1a0] sm:$0xff] }
  0x2e   :  { %829 = vmatprep.subr.bf16.mxu1 %v828_v2  ;;  %v50_v41 = vld [vmem:[#allocation2 + $0x19] sm:$0xff]  ;;  %v55_v42 = vld [vmem:[#allocation2 + $0x22] sm:$0xff]  ;;  %v876_v49 = vpack.c.bf16 %v339_v40, %v338_v39  ;;  %v326_v58 = vld [vmem:[#allocation3 + $0x240] sm:$0xff] }
  0x2f   :  { %799 = vmatpush3.bf16.msra.mxu0 %v798_v8  ;;  %v307_v46 = vld [vmem:[#allocation3 + $0x1a8] sm:$0xff]  ;;  %v324_v47 = vld [vmem:[#allocation3 + $0x230] sm:$0xff]  ;;  %v325_v48 = vld [vmem:[#allocation3 + $0x238] sm:$0xff] }
  0x30   :  { %801 = vmatprep.subr.bf16.mxu0 %v800_v10  ;;  %v46_v50 = vld [vmem:[#allocation2 + $0x18] sm:$0xff]  ;;  %v51_v51 = vld [vmem:[#allocation2 + $0x21] sm:$0xff]  ;;  %v846_v52 = vpack.c.bf16 %v307_v46, %v306_v45  ;;  %v848_v53 = vpack.c.bf16 %v325_v48, %v324_v47  ;;  %v310_v63 = vld [vmem:[#allocation3 + $0x1c0] sm:$0xff] }
  0x31   :  { %831 = vmatpush3.bf16.msra.mxu1 %v828_v2  ;;  %v47_v54 = vld [vmem:[#allocation2 + $0x20] sm:$0xff]  ;;  %v309_v56 = vld [vmem:[#allocation3 + $0x1b8] sm:$0xff]  ;;  %v327_v59 = vld [vmem:[#allocation3 + $0x248] sm:$0xff] }
  0x32   :  { %833 = vmatprep.subr.bf16.mxu1 %v832_v13  ;;  %v308_v55 = vld [vmem:[#allocation3 + $0x1b0] sm:$0xff]  ;;  %v852_v60 = vpack.c.bf16 %v327_v59, %v326_v58  ;;  %v341_v62 = vld [vmem:[#allocation3 + $0x2b8] sm:$0xff]  ;;  %v311_v1 = vld [vmem:[#allocation3 + $0x1c8] sm:$0xff] }
  0x33   :  { %803 = vmatpush3.bf16.msra.mxu0 %v802_v18  ;;  %v850_v57 = vpack.c.bf16 %v309_v56, %v308_v55  ;;  %v340_v61 = vld [vmem:[#allocation3 + $0x2b0] sm:$0xff]  ;;  %v854_v2 = vpack.c.bf16 %v311_v1, %v310_v63  ;;  %v329_v4 = vld [vmem:[#allocation3 + $0x258] sm:$0xff]  ;;  %v342_v6 = vld [vmem:[#allocation3 + $0x2c0] sm:$0xff] }
  0x34   :  { %837 = vmatprep.subr.bf16.mxu0 %v836_v19  ;;  %v880_v0 = vpack.c.bf16 %v341_v62, %v340_v61  ;;  %v328_v3 = vld [vmem:[#allocation3 + $0x250] sm:$0xff]  ;;  %v343_v7 = vld [vmem:[#allocation3 + $0x2c8] sm:$0xff]  ;;  %v313_v10 = vld [vmem:[#allocation3 + $0x1d8] sm:$0xff] }
  0x35   :  { %835 = vmatpush3.bf16.msra.mxu1 %v832_v13  ;;  %v856_v5 = vpack.c.bf16 %v329_v4, %v328_v3  ;;  %v312_v8 = vld [vmem:[#allocation3 + $0x1d0] sm:$0xff]  ;;  %v884_v9 = vpack.c.bf16 %v343_v7, %v342_v6  ;;  %v330_v12 = vld [vmem:[#allocation3 + $0x260] sm:$0xff]  ;;  %v331_v13 = vld [vmem:[#allocation3 + $0x268] sm:$0xff] }
  0x36   :  { %869 = vmatprep.subr.bf16.mxu1 %v868_v22  ;;  %176 = vmatmul.mubr.f32.vlgmr.msra.gmra.mrb[0].mxu0 %v44_v25  ;;  %v858_v11 = vpack.c.bf16 %v313_v10, %v312_v8  ;;  %v860_v14 = vpack.c.bf16 %v331_v13, %v330_v12  ;;  %v344_v15 = vld [vmem:[#allocation3 + $0x2d0] sm:$0xff]  ;;  %v345_v16 = vld [vmem:[#allocation3 + $0x2d8] sm:$0xff]  ;;  %v314_v17 = vld [vmem:[#allocation3 + $0x1e0] sm:$0xff] }
  0x37   :  { %180 = vmatprep.mubr.f32.mxu0 %v49_v28  ;;  %839 = vmatpush3.bf16.msra.mxu0 %v838_v30  ;;  %v888_v18 = vpack.c.bf16 %v345_v16, %v344_v15  ;;  %v315_v19 = vld [vmem:[#allocation3 + $0x1e8] sm:$0xff]  ;;  %v332_v21 = vld [vmem:[#allocation3 + $0x270] sm:$0xff]  ;;  %v346_v24 = vld [vmem:[#allocation3 + $0x2e0] sm:$0xff] }
  0x38   :  { %729 = vmatmul.mubr.f32.vlgmr.msra.gmra.mrb[0].mxu1 %v53_v29  ;;  %841 = vmatprep.subr.bf16.mxu0 %v840_v32  ;;  %v862_v20 = vpack.c.bf16 %v315_v19, %v314_v17  ;;  %v347_v25 = vld [vmem:[#allocation3 + $0x2e8] sm:$0xff]  ;;  %v316_v26 = vld [vmem:[#allocation3 + $0x1f0] sm:$0xff]  ;;  %v317_v28 = vld [vmem:[#allocation3 + $0x1f8] sm:$0xff] }
  0x39   :  { %731 = vmatprep.mubr.f32.mxu1 %v54_v31  ;;  %871 = vmatpush3.bf16.msra.mxu1 %v868_v22  ;;  %v333_v22 = vld [vmem:[#allocation3 + $0x278] sm:$0xff]  ;;  %v892_v27 = vpack.c.bf16 %v347_v25, %v346_v24  ;;  %v866_v29 = vpack.c.bf16 %v317_v28, %v316_v26  ;;  %v348_v30 = vld [vmem:[#allocation3 + $0x2f0] sm:$0xff] }
  0x3a   :  { %181 = vmatmul.mubr.f32.gmra.mrb[2].mxu0 %v45_v38  ;;  %873 = vmatprep.subr.bf16.mxu1 %v872_v37  ;;  %v864_v23 = vpack.c.bf16 %v333_v22, %v332_v21  ;;  %v349_v31 = vld [vmem:[#allocation3 + $0x2f8] sm:$0xff]  ;;  %v565_v36 = vld [vmem:[%s1032_s2] ss:$0 sm:$0xff]  ;;  %v567_v8 = vld [vmem:[%s1032_s2 + $0x1] ss:$0 sm:$0xff]  ;;  %s957_s2 = smov [#allocation6]  }
  0x3b   :  { %185 = vmatprep.mubr.f32.mxu0 %v50_v41  ;;  %843 = vmatpush3.bf16.msra.mxu0 %v842_v43  ;;  %v896_v32 = vpack.c.bf16 %v349_v31, %v348_v30  ;;  %s553_s9 = sshll.u32 %s957_s2, 4  ;;  %s554_s9 = int_to_ptr.vmem [resolvable:$true] %s553_s9 }
  0x3c   :  { %732 = vmatmul.mubr.f32.gmra.mrb[2].mxu1 %v55_v42  ;;  %845 = vmatprep.subr.bf16.mxu0 %v844_v44  ;;  %s927_s10 = scalar_lea.vmem %s554_s9, 256  ;;  %p932_p9 = scmp.lt.s32.totalorder %s554_s9, %s554_s9 }
  0x3d   :  { %875 = vmatpush3.bf16.msra.mxu1 %v872_v37  ;;  %p928_p8 = scmp.ne.s32.totalorder %s554_s9, %s927_s10  ;;  %p933_p10 = scmp.lt.s32.totalorder %s927_s10, %s927_s10 }
  0x3e   :  { %186 = vmatmul.mubr.f32.gmra.mrb[4].mxu0 %v46_v50  ;;  %877 = vmatprep.subr.bf16.mxu1 %v876_v49 }
  0x3f   :  { %190 = vmatprep.mubr.f32.mxu0 %v51_v51  ;;  %847 = vmatpush3.bf16.msra.mxu0 %v846_v52  ;;  %p934_p11 = por %p933_p10, %p932_p9 }
  0x40   :  { %849 = vmatprep.subr.bf16.mxu0 %v848_v53 }
  0x41   :  { %879 = vmatpush3.bf16.msra.mxu1 %v876_v49  ;;  %p935_p12 = pnand %p934_p11, %p928_p8 }
  0x42   :  { %191 = vmatmul.mubr.f32.gmra.mrb[6].mxu0 %v47_v54  ;;  %881 = vmatprep.subr.bf16.mxu1 %v880_v0 }
  0x43   :  { %851 = vmatpush3.bf16.msra.mxu0 %v850_v57 }
  0x44   :  { %853 = vmatprep.subr.bf16.mxu0 %v852_v60 }
  0x45   :  { %883 = vmatpush3.bf16.msra.mxu1 %v880_v0 }
  0x46   :  { %885 = vmatprep.subr.bf16.mxu1 %v884_v9 }
  0x47   :  { %855 = vmatpush3.bf16.msra.mxu0 %v854_v2 }
  0x48   :  { %857 = vmatprep.subr.bf16.mxu0 %v856_v5 }
  0x49   :  { %887 = vmatpush3.bf16.msra.mxu1 %v884_v9 }
  0x4a   :  { %889 = vmatprep.subr.bf16.mxu1 %v888_v18 }
  0x4b   :  { %859 = vmatpush3.bf16.msra.mxu0 %v858_v11 }
  0x4c   :  { %861 = vmatprep.subr.bf16.mxu0 %v860_v14 }
  0x4d   :  { %891 = vmatpush3.bf16.msra.mxu1 %v888_v18 }
  0x4e   :  { %893 = vmatprep.subr.bf16.mxu1 %v892_v27 }
  0x4f   :  { %863 = vmatpush3.bf16.msra.mxu0 %v862_v20 }
  0x50   :  { %865 = vmatprep.subr.bf16.mxu0 %v864_v23 }
  0x51   :  { %895 = vmatpush3.bf16.msra.mxu1 %v892_v27 }
  0x52   :  { %897 = vmatprep.subr.bf16.mxu1 %v896_v32 }
  0x53   :  { %867 = vmatpush3.bf16.msra.mxu0 %v866_v29 }
  0x55   :  { %899 = vmatpush3.bf16.msra.mxu1 %v896_v32 }
 0x109   :  { %v600_v33 = vpop.f32.mrb[0].mxu0 }
 0x10a   :  { %v601_v34 = vpop.f32.mrb[1].mxu0 }
 0x10b   :  { %v730_v35 = vpop.f32.mrb[0].mxu1  ;;  %v602_v37 = vadd.f32 %v601_v34, %v600_v33 }
 0x10c   :  { %v262_v38 = vpop.f32.mrb[1].mxu1 }
 0x10d   :  { %v603_v39 = vpop.f32.mrb[2].mxu0  ;;  %v178_v40 = vadd.f32 %v602_v37, %v565_v36 }
 0x10e   :  { %v604_v41 = vpop.f32.mrb[3].mxu0 }
 0x10f   :  { %v733_v42 = vpop.f32.mrb[2].mxu1  ;;  %v263_v43 = vadd.f32 %v262_v38, %v178_v40  ;;  %v605_v44 = vadd.f32 %v604_v41, %v603_v39 }
 0x110   :  { %v272_v45 = vpop.f32.mrb[3].mxu1 }
 0x111   :  { %v281_v46 = vmax.f32 %v263_v43, 0.0  ;;  %v183_v47 = vadd.f32 %v605_v44, %v565_v36  ;;  %v606_v48 = vpop.f32.mrb[4].mxu0 }
 0x112   :  { %v607_v49 = vpop.f32.mrb[5].mxu0 }
 0x113   :  { %285 = vst [vmem:[#allocation2 + $0x1] sm:$0xff] %v281_v46  ;;  %v268_v50 = vadd.f32 %v730_v35, %v183_v47  ;;  %v608_v51 = vadd.f32 %v607_v49, %v606_v48  ;;  %422 = vmatprep.mubr.f32.mxu0 %v281_v46 }
 0x115   :  { %v282_v52 = vmax.f32 %v268_v50, 0.0  ;;  %v609_v53 = vpop.f32.mrb[6].mxu0  ;;  %v188_v54 = vadd.f32 %v608_v51, %v565_v36 }
 0x116   :  { %v610_v55 = vpop.f32.mrb[7].mxu0 }
 0x117   :  { %286 = vst [vmem:[#allocation2 + $0x9] sm:$0xff] %v282_v52  ;;  %v273_v56 = vadd.f32 %v272_v45, %v188_v54  ;;  %v611_v57 = vadd.f32 %v610_v55, %v609_v53 }
 0x119   :  { %v283_v58 = vmax.f32 %v273_v56, 0.0  ;;  %v193_v59 = vadd.f32 %v611_v57, %v565_v36 }
 0x11a   :  { %v289_v60 = vld [vmem:[#allocation2] sm:$0xff] }
 0x11b   :  { %287 = vst [vmem:[#allocation2 + $0x19] sm:$0xff] %v283_v58  ;;  %v278_v61 = vadd.f32 %v733_v42, %v193_v59  ;;  %423 = vmatmul.mubr.f32.vlgmr.msra.gmra.mrb[8].mxu0 %v289_v60 }
 0x11c   :  { %427 = vmatprep.mubr.f32.mxu0 %v282_v52 }
 0x11d   :  { %v284_v62 = vmax.f32 %v278_v61, 0.0 }
 0x11e   :  { %v297_v63 = vld [vmem:[#allocation2 + $0x2] sm:$0xff]  ;;  %v298_v1 = vld [vmem:[#allocation2 + $0xa] sm:$0xff] }
 0x11f   :  { %v290_v0 = vld [vmem:[#allocation2 + $0x8] sm:$0xff]  ;;  %288 = vst [vmem:[#allocation2 + $0x21] sm:$0xff] %v284_v62  ;;  %766 = vmatprep.mubr.f32.mxu1 %v297_v63 }
 0x120   :  { %428 = vmatmul.mubr.f32.gmra.mrb[10].mxu0 %v290_v0  ;;  %767 = vmatmul.mubr.f32.vlgmr.msra.gmra.mrb[4].mxu1 %v298_v1 }
 0x121   :  { %432 = vmatprep.mubr.f32.mxu0 %v283_v58 }
 0x122   :  { %v291_v2 = vld [vmem:[#allocation2 + $0x18] sm:$0xff] }
 0x124   :  { %433 = vmatmul.mubr.f32.gmra.mrb[12].mxu0 %v291_v2 }
 0x125   :  { %437 = vmatprep.mubr.f32.mxu0 %v284_v62 }
 0x126   :  { %v299_v3 = vld [vmem:[#allocation2 + $0x1a] sm:$0xff]  ;;  %v300_v5 = vld [vmem:[#allocation2 + $0x22] sm:$0xff] }
 0x127   :  { %v292_v4 = vld [vmem:[#allocation2 + $0x20] sm:$0xff]  ;;  %769 = vmatprep.mubr.f32.mxu1 %v299_v3 }
 0x128   :  { %438 = vmatmul.mubr.f32.gmra.mrb[14].mxu0 %v292_v4  ;;  %770 = vmatmul.mubr.f32.gmra.mrb[6].mxu1 %v300_v5 }
 0x1ee   :  { %v664_v6 = vpop.f32.mrb[8].mxu0 }
 0x1ef   :  { %v665_v7 = vpop.f32.mrb[9].mxu0 }
 0x1f0   :  { %v666_v9 = vadd.f32 %v665_v7, %v664_v6 }
 0x1f2   :  { %v425_v11 = vadd.f32 %v666_v9, %v567_v8 }
 0x1f3   :  { %v667_v10 = vpop.f32.mrb[10].mxu0  ;;  %v768_v12 = vpop.f32.mrb[4].mxu1 }
 0x1f4   :  { %v668_v13 = vpop.f32.mrb[11].mxu0  ;;  %v509_v15 = vpop.f32.mrb[5].mxu1 }
 0x1f5   :  { %v669_v14 = vadd.f32 %v668_v13, %v667_v10  ;;  %v510_v16 = vadd.f32 %v509_v15, %v425_v11 }
 0x1f7   :  { %v430_v17 = vadd.f32 %v669_v14, %v567_v8  ;;  %v670_v18 = vpop.f32.mrb[12].mxu0  ;;  %v528_v19 = vmax.f32 %v510_v16, 0.0 }
 0x1f8   :  { %v671_v20 = vpop.f32.mrb[13].mxu0 }
 0x1f9   :  { %v515_v21 = vadd.f32 %v768_v12, %v430_v17  ;;  %v672_v22 = vadd.f32 %v671_v20, %v670_v18  ;;  %532 = vst [vmem:[#allocation2 + $0x1] sm:$0xff] %v528_v19 }
 0x1fb   :  { %v529_v23 = vmax.f32 %v515_v21, 0.0  ;;  %v673_v24 = vpop.f32.mrb[14].mxu0  ;;  %v435_v25 = vadd.f32 %v672_v22, %v567_v8  ;;  %v771_v26 = vpop.f32.mrb[6].mxu1 }
 0x1fc   :  { %v674_v27 = vpop.f32.mrb[15].mxu0  ;;  %v519_v29 = vpop.f32.mrb[7].mxu1 }
 0x1fd   :  { %533 = vst [vmem:[#allocation2 + $0x9] sm:$0xff] %v529_v23  ;;  %v675_v28 = vadd.f32 %v674_v27, %v673_v24  ;;  %v520_v30 = vadd.f32 %v519_v29, %v435_v25 }
 0x1ff   :  { %v440_v31 = vadd.f32 %v675_v28, %v567_v8  ;;  %v530_v32 = vmax.f32 %v520_v30, 0.0 }
 0x201   :  { %v525_v33 = vadd.f32 %v771_v26, %v440_v31  ;;  %534 = vst [vmem:[#allocation2 + $0x19] sm:$0xff] %v530_v32 }
 0x203   :  { %v531_v34 = vmax.f32 %v525_v33, 0.0 }
 0x204   :  { %v537_v35 = vld [vmem:[#allocation2 + $0x1] ss:$2 sm:$0xff]  ;;  %v541_v36 = vld [vmem:[#allocation2 + $0x2] ss:$2 sm:$0xff] }
 0x205   :  { %535 = vst [vmem:[#allocation2 + $0x21] sm:$0xff] %v531_v34  ;;  %v544_v37 = vmax.f32 %v537_v35, %v541_v36 }
 0x207   :  { %546 = vst [vmem:[#allocation6] sm:$0xff] %v544_v37 }
 0x20c   :  { %v539_v38 = vld [vmem:[#allocation2 + $0x19] ss:$2 sm:$0xff]  ;;  %v543_v39 = vld [vmem:[#allocation2 + $0x1a] ss:$2 sm:$0xff] }
 0x20d   :  { %v545_v40 = vmax.f32 %v539_v38, %v543_v39 }
 0x20f   :  { %547 = vst [vmem:[#allocation6 + $0x8] sm:$0xff] %v545_v40 }
 0x210   :  { %938 = shalt.err (!%p935_p12)
}
 0x211   :  { %s939_s13 = scalar_lea.hbm %s1033_s3, 256 }
 0x212   :  { %p940_p13 = scmp.ne.s32.totalorder %s1033_s3, %s939_s13  ;;  %p943_p0 = scmp.lt.u32.totalorder %s939_s13, %s1033_s3 }
 0x214   :  { %p945_p1 = pnand %p943_p0, %p940_p13 }
 0x216   :  { %948 = shalt.err (!%p945_p1)
}
 0x217   :  { %559 = dma.vmem_to_hbm [thread:$0]  %s554_s9, 256, %s1033_s3, [#allocation5], %s954_s22, %s954_s22, %s955_s23  }
 0x218   :  { %951 = dma.done.wait [#allocation5], 256  }
 0x219   :  { %952 = vsyncadd [#allocation5], 4294967040 }
 0x21a   :  { %563 = vsyncpa [#allocation4], 1 }
 0x21b   :  { %564 = vsyncpa [#allocation5], 1 }

</bundles_post_ra>
